<compile_context>
chip_gen: v5e
topology: v5e:2x2
jax: 0.10.0
libtpu: 0.0.40
codegen_flags: <defaults>
</compile_context>

<pallas_src>
import functools

import jax
import jax.numpy as jnp
from jax.experimental import pallas as pl
from jax.experimental.pallas import tpu as pltpu


# ---------------------------------------------------------------------------
# Generation-aware VMEM sizing
# ---------------------------------------------------------------------------
def _vmem_budget():
    """Returns (tile-sizing budget, vmem_limit_bytes) for this TPU generation."""
    try:
        cap = int(pltpu.get_tpu_info().vmem_capacity_bytes)
    except Exception:  # no TPU info available -> assume the smallest (v7x 64 MiB)
        cap = 64 * 1024 * 1024
    budget = min(cap * 3 // 8, 48 * 1024 * 1024)   # 24 MiB on v7x, 48 MiB on v5e/v6e
    limit = min(cap // 2, 64 * 1024 * 1024)        # 32 MiB on v7x, 64 MiB on v5e/v6e
    return budget, limit


def _focal_factor(pt, gamma):
    """(1 - pt)**gamma with an integer-gamma multiply fast path."""
    one_minus = 1.0 - pt
    g = float(gamma)
    gi = int(g)
    if g == gi and 0 <= gi <= 8:
        if gi == 0:
            return jnp.ones_like(pt)
        out = one_minus
        for _ in range(gi - 1):
            out = out * one_minus
        return out
    # Non-integer gamma: clamp at 0 (reference would NaN if pt > 1 by rounding).
    return jnp.power(jnp.maximum(one_minus, 0.0), jnp.float32(g))


# ---------------------------------------------------------------------------
# Kernel 1: classes on sublanes, spatial positions on lanes  (N, C, HW layout)
# ---------------------------------------------------------------------------
def _focal_nchw_kernel(x_ref, t_ref, *rest, gamma, hw, tile_l, steps,
                       use_alpha, needs_mask):
    if use_alpha:
        a_ref, o_ref, acc_ref = rest
    else:
        a_ref = None
        o_ref, acc_ref = rest

    s = pl.program_id(2)

    @pl.when(s == 0)
    def _():
        acc_ref[...] = jnp.zeros_like(acc_ref)

    x = x_ref[...].astype(jnp.float32)            # (bn, C, TL) logits
    t = t_ref[...]                                # (bn, 1, TL) int32 targets

    # Numerically stable log-softmax along the class (sublane) axis.
    mx = jnp.max(x, axis=1, keepdims=True)
    z = x - mx
    lse = jnp.log(jnp.sum(jnp.exp(z), axis=1, keepdims=True))

    # One-hot select of the target class (no cross-lane gather on TPU).
    # TODO(synk): out-of-range targets silently contribute 0 loss instead of
    # raising like PyTorch's gather.
    cls = jax.lax.broadcasted_iota(jnp.int32, z.shape, 1)
    onehot = cls == t
    z_t = jnp.sum(jnp.where(onehot, z, 0.0), axis=1, keepdims=True)
    logpt = z_t - lse                              # (bn, 1, TL)
    pt = jnp.exp(logpt)

    focal = _focal_factor(pt, gamma)

    if use_alpha:
        a = a_ref[...].astype(jnp.float32)[None]   # (1, C, 1)
        at = jnp.sum(jnp.where(onehot, a, 0.0), axis=1, keepdims=True)
        loss = -focal * (at * logpt)
    else:
        loss = -focal * logpt                      # alpha=None specialisation

    loss = jnp.sum(loss, axis=0)                   # fold samples -> (1, TL)

    if needs_mask:
        # Ragged tail / tile-axis overshoot: pay the iota+compare+select only
        # on tail steps.  Keep jnp.where (select) -- padded columns may hold
        # inf/NaN and a multiply-mask would propagate it.
        l_global = pl.program_id(1) * steps + s
        is_tail = (l_global + 1) * tile_l > hw

        @pl.when(is_tail)
        def _():
            col = l_global * tile_l + jax.lax.broadcasted_iota(
                jnp.int32, loss.shape, 1)
            acc_ref[...] += jnp.where(col < hw, loss, 0.0)

        @pl.when(jnp.logical_not(is_tail))
        def _():
            acc_ref[...] += loss
    else:
        acc_ref[...] += loss

    @pl.when(s == steps - 1)
    def _():
        o_ref[...] = jnp.broadcast_to(
            jnp.sum(acc_ref[...]), o_ref.shape).astype(o_ref.dtype)


def _choose_tiling_nchw(n, c, hw, itemsize, budget):
    """Pick (samples-per-step, lane tile, number of lane tiles)."""
    c_sub = max(c, 8)  # sublane padding of the class axis
    # Per-lane VMEM bytes for one sample: double-buffered logits, double-
    # buffered int32 targets (sublane-padded to 8) and the f32 accumulator.
    per_lane = 2 * c_sub * itemsize + 2 * 8 * 4 + 4
    lane_cap = max(128, (budget // per_lane) // 128 * 128)
    lane_cap = min(lane_cap, 65536)
    if hw <= lane_cap:
        tile_l, l_tiles = hw, 1          # single full-width tile, no tail mask
    else:
        tile_l, l_tiles = lane_cap, int(pl.cdiv(hw, lane_cap))

    # Fold samples so each grid step moves ~2 MiB (amortise ~0.35 us/step).
    step_target = 2 * 1024 * 1024
    per_samp = (c_sub * itemsize + 8 * 4) * tile_l
    bn_cap = max(1, step_target // per_samp)
    bn_cap = min(bn_cap, max(1, (budget - tile_l * 4) // (2 * per_samp)))
    if l_tiles == 1 and n >= 2:
        # Keep >= 2 sample-groups so the parallel axis can feed both v7x TCs
        # when there is no lane-tile axis left to split.
        bn_cap = min(bn_cap, n // 2)
    bn_cap = max(1, min(int(bn_cap), n))
    bn = 1
    for d in range(1, bn_cap + 1):       # largest divisor of n (no ragged groups)
        if n % d == 0:
            bn = d
    return bn, int(tile_l), int(l_tiles)


def _parallel_split(n_groups, tiles):
    """Give v7x's 2 TensorCores a 2-way parallel axis when samples can't."""
    if n_groups >= 2 or tiles < 2:
        return 1
    return 2


def _run_nchw(x, t, gamma, alpha_vec, budget, vmem_limit):
    n, c, hw = x.shape
    bn, tile_l, l_tiles = _choose_tiling_nchw(n, c, hw, x.dtype.itemsize, budget)
    n_groups = n // bn
    p_split = _parallel_split(n_groups, l_tiles)
    steps = int(pl.cdiv(l_tiles, p_split))
    needs_mask = (l_tiles * tile_l != hw) or (p_split * steps != l_tiles)
    use_alpha = alpha_vec is not None

    def tile_idx(p, s):
        # Clamp overshoot tiles (p_split split of an odd tile count); the
        # kernel masks their contribution to zero.
        return jnp.minimum(p * steps + s, l_tiles - 1)

    in_specs = [
        pl.BlockSpec((bn, c, tile_l), lambda g, p, s: (g, 0, tile_idx(p, s))),
        pl.BlockSpec((bn, 1, tile_l), lambda g, p, s: (g, 0, tile_idx(p, s))),
    ]
    args = [x, t]
    if use_alpha:
        in_specs.append(pl.BlockSpec((c, 1), lambda g, p, s: (0, 0)))
        args.append(alpha_vec.reshape(c, 1))

    kernel = functools.partial(
        _focal_nchw_kernel, gamma=float(gamma), hw=hw, tile_l=tile_l,
        steps=steps, use_alpha=use_alpha, needs_mask=needs_mask)

    out = pl.pallas_call(
        kernel,
        out_shape=jax.ShapeDtypeStruct((n_groups, p_split, 1, 128), jnp.float32),
        grid_spec=pltpu.PrefetchScalarGridSpec(
            num_scalar_prefetch=0,
            grid=(n_groups, p_split, steps),
            in_specs=in_specs,
            out_specs=pl.BlockSpec((1, 1, 1, 128),
                                   lambda g, p, s: (g, p, 0, 0)),
            scratch_shapes=[pltpu.VMEM((1, tile_l), jnp.float32)],
        ),
        compiler_params=pltpu.CompilerParams(
            dimension_semantics=("parallel", "parallel", "arbitrary"),
            vmem_limit_bytes=vmem_limit),
    )(*args)

    return jnp.sum(out[:, :, 0, 0])


# ---------------------------------------------------------------------------
# Kernel 2: 2-D inputs with C >= 128 -- classes on lanes, no host transpose
# ---------------------------------------------------------------------------
def _focal_rowmajor_kernel(x_ref, t_ref, *rest, gamma, m, tile_m, steps,
                           use_alpha, needs_mask):
    if use_alpha:
        a_ref, o_ref, acc_ref = rest
    else:
        a_ref = None
        o_ref, acc_ref = rest

    s = pl.program_id(1)

    @pl.when(s == 0)
    def _():
        acc_ref[...] = jnp.zeros_like(acc_ref)

    x = x_ref[...].astype(jnp.float32)            # (TM, C) classes on lanes
    t = t_ref[...]                                # (TM, 1) int32

    mx = jnp.max(x, axis=1, keepdims=True)        # cross-lane (XLU) reduce
    z = x - mx
    lse = jnp.log(jnp.sum(jnp.exp(z), axis=1, keepdims=True))

    cls = jax.lax.broadcasted_iota(jnp.int32, z.shape, 1)
    onehot = cls == t
    z_t = jnp.sum(jnp.where(onehot, z, 0.0), axis=1, keepdims=True)
    logpt = z_t - lse                              # (TM, 1)
    pt = jnp.exp(logpt)

    focal = _focal_factor(pt, gamma)
    if use_alpha:
        a = a_ref[...].astype(jnp.float32)         # (1, C)
        at = jnp.sum(jnp.where(onehot, a, 0.0), axis=1, keepdims=True)
        loss = -focal * (at * logpt)
    else:
        loss = -focal * logpt                      # (TM, 1)

    if needs_mask:
        t_global = pl.program_id(0) * steps + s
        is_tail = (t_global + 1) * tile_m > m

        @pl.when(is_tail)
        def _():
            row = t_global * tile_m + jax.lax.broadcasted_iota(
                jnp.int32, loss.shape, 0)
            acc_ref[...] += jnp.where(row < m, loss, 0.0)

        @pl.when(jnp.logical_not(is_tail))
        def _():
            acc_ref[...] += loss
    else:
        acc_ref[...] += loss

    @pl.when(s == steps - 1)
    def _():
        o_ref[...] = jnp.broadcast_to(
            jnp.sum(acc_ref[...]), o_ref.shape).astype(o_ref.dtype)


def _choose_tiling_rowmajor(m, c, itemsize, budget):
    c_lane = -(-c // 128) * 128
    per_row = 2 * c_lane * itemsize + 2 * 128 * 4 + 128 * 4
    row_cap = max(8, (budget // per_row) // 8 * 8)
    row_cap = min(row_cap, 32768)
    if m <= row_cap:
        return m, 1
    return row_cap, int(pl.cdiv(m, row_cap))


def _run_rowmajor(x, t, gamma, alpha_vec, budget, vmem_limit):
    m, c = x.shape
    tile_m, m_tiles = _choose_tiling_rowmajor(m, c, x.dtype.itemsize, budget)
    p_split = _parallel_split(1, m_tiles)
    steps = int(pl.cdiv(m_tiles, p_split))
    needs_mask = (m_tiles * tile_m != m) or (p_split * steps != m_tiles)
    use_alpha = alpha_vec is not None

    def tile_idx(p, s):
        return jnp.minimum(p * steps + s, m_tiles - 1)

    in_specs = [
        pl.BlockSpec((tile_m, c), lambda p, s: (tile_idx(p, s), 0)),
        pl.BlockSpec((tile_m, 1), lambda p, s: (tile_idx(p, s), 0)),
    ]
    args = [x, t]
    if use_alpha:
        in_specs.append(pl.BlockSpec((1, c), lambda p, s: (0, 0)))
        args.append(alpha_vec.reshape(1, c))

    kernel = functools.partial(
        _focal_rowmajor_kernel, gamma=float(gamma), m=m, tile_m=tile_m,
        steps=steps, use_alpha=use_alpha, needs_mask=needs_mask)

    out = pl.pallas_call(
        kernel,
        out_shape=jax.ShapeDtypeStruct((p_split, 1, 128), jnp.float32),
        grid_spec=pltpu.PrefetchScalarGridSpec(
            num_scalar_prefetch=0,
            grid=(p_split, steps),
            in_specs=in_specs,
            out_specs=pl.BlockSpec((1, 1, 128), lambda p, s: (p, 0, 0)),
            scratch_shapes=[pltpu.VMEM((tile_m, 1), jnp.float32)],
        ),
        compiler_params=pltpu.CompilerParams(
            dimension_semantics=("parallel", "arbitrary"),
            vmem_limit_bytes=vmem_limit),
    )(*args)

    return jnp.sum(out[:, 0, 0])


# ---------------------------------------------------------------------------
# Public wrapper (mirrors the PyTorch FocalLoss.forward)
# ---------------------------------------------------------------------------
def _alpha_vector(alpha, c):
    if alpha is None:
        return None
    if isinstance(alpha, (float, int)):
        assert c == 2, "scalar alpha implies binary classification"
        return jnp.array([float(alpha), 1.0 - float(alpha)], dtype=jnp.float32)
    return jnp.asarray(alpha, dtype=jnp.float32).reshape(-1)


def focal_loss_pallas(logits, target, *, gamma=0.0, alpha=None,
                      size_average=True):
    """logits: (N, C) or (N, C, *spatial); target: integer class indices."""
    budget, vmem_limit = _vmem_budget()

    if logits.ndim > 2:
        n, c = logits.shape[0], logits.shape[1]
        x = logits.reshape(n, c, -1)                       # free reshape
        t = target.reshape(n, 1, -1).astype(jnp.int32)
        total = n * x.shape[2]
        result = _run_nchw(x, t, gamma, _alpha_vector(alpha, c),
                           budget, vmem_limit)
    else:
        m, c = logits.shape
        total = m
        if c >= 128:
            # No host-side transpose: block (tile_m, C) with classes on lanes.
            t2 = target.reshape(m, 1).astype(jnp.int32)
            result = _run_rowmajor(logits, t2, gamma, _alpha_vector(alpha, c),
                                   budget, vmem_limit)
        else:
            # Small C: one cheap transpose into the sublane-class kernel.
            x = logits.T[None]                             # (1, C, M)
            t = target.reshape(1, 1, -1).astype(jnp.int32)
            result = _run_nchw(x, t, gamma, _alpha_vector(alpha, c),
                               budget, vmem_limit)

    if size_average:
        result = result / jnp.float32(total)
    return result


def focal_loss_ref(logits, target, *, gamma=0.0, alpha=None, size_average=True):
    """Pure-JAX reference mirroring the PyTorch forward."""
    if logits.ndim > 2:
        n, c = logits.shape[0], logits.shape[1]
        x = jnp.transpose(logits.reshape(n, c, -1), (0, 2, 1)).reshape(-1, c)
    else:
        x = logits
        c = x.shape[1]
    t = target.reshape(-1).astype(jnp.int32)
    logp = jax.nn.log_softmax(x.astype(jnp.float32), axis=1)
    logpt = jnp.take_along_axis(logp, t[:, None], axis=1)[:, 0]
    pt = jnp.exp(logpt)
    if alpha is not None:
        if isinstance(alpha, (float, int)):
            a = jnp.array([alpha, 1.0 - alpha], dtype=jnp.float32)
        else:
            a = jnp.asarray(alpha, dtype=jnp.float32)
        logpt = logpt * a[t]
    loss = -1.0 * (1.0 - pt) ** gamma * logpt
    return loss.mean() if size_average else loss.sum()


if __name__ == "__main__":
    key = jax.random.PRNGKey(0)
    k1, k2, k3, k4 = jax.random.split(key, 4)

    # 4-D segmentation-style input: N=2, C=4, H=W=16  ->  512 positions.
    N, C, H, W = 2, 4, 16, 16
    logits = jax.random.normal(k1, (N, C, H, W), dtype=jnp.float32)
    target = jax.random.randint(k2, (N, H, W), 0, C, dtype=jnp.int32)

    # Config 1: per-class alpha, gamma=2 (integer fast path), mean reduction.
    out = focal_loss_pallas(logits, target, gamma=2.0,
                            alpha=[0.1, 0.2, 0.3, 0.4], size_average=True)
    out = jax.block_until_ready(out)
    ref = focal_loss_ref(logits, target, gamma=2.0,
                         alpha=[0.1, 0.2, 0.3, 0.4], size_average=True)
    assert jnp.allclose(out, ref, rtol=2e-5, atol=1e-5), (out, ref)

    # Config 2: no alpha (specialised kernel), gamma=0, sum reduction.
    out2 = focal_loss_pallas(logits, target, gamma=0.0, alpha=None,
                             size_average=False)
    out2 = jax.block_until_ready(out2)
    ref2 = focal_loss_ref(logits, target, gamma=0.0, alpha=None,
                          size_average=False)
    assert jnp.allclose(out2, ref2, rtol=2e-5, atol=1e-4), (out2, ref2)

    # Config 3: 2-D input with C >= 128 -> row-major (no-transpose) kernel.
    M2, C2 = 64, 256
    logits2 = jax.random.normal(k3, (M2, C2), dtype=jnp.float32)
    target2 = jax.random.randint(k4, (M2,), 0, C2, dtype=jnp.int32)
    out3 = focal_loss_pallas(logits2, target2, gamma=2.0, alpha=None,
                             size_average=True)
    out3 = jax.block_until_ready(out3)
    ref3 = focal_loss_ref(logits2, target2, gamma=2.0, alpha=None,
                          size_average=True)
    assert jnp.allclose(out3, ref3, rtol=2e-5, atol=1e-5), (out3, ref3)

    print("KERNEL_OK")
</pallas_src>

<mosaic_0001>
module attributes {stable_mosaic.version = 11 : i64} {
  func.func @_focal_nchw_kernel(%arg0: i32, %arg1: i32, %arg2: i32, %arg3: memref<1x4x256xf32, #tpu.memory_space<vmem>>, %arg4: memref<1x1x256xi32, #tpu.memory_space<vmem>>, %arg5: memref<4x1xf32, #tpu.memory_space<vmem>>, %arg6: memref<1x1x1x128xf32, #tpu.memory_space<vmem>>, %arg7: memref<1x256xf32, #tpu.memory_space<vmem>>) attributes {dimension_semantics = [#tpu.dimension_semantics<parallel>, #tpu.dimension_semantics<parallel>, #tpu.dimension_semantics<arbitrary>], iteration_bounds = array<i64: 2, 1, 1>, scalar_prefetch = 0 : i64, scratch_operands = 1 : i64, tpu.core_type = #tpu.core_type<tc>, window_params = [{transform_indices = @transform_0, window_bounds = array<i64: 1, 4, 256>}, {transform_indices = @transform_1, window_bounds = array<i64: 1, 1, 256>}, {pipeline_mode = #tpu.pipeline_mode<synchronous>, transform_indices = @transform_2, window_bounds = array<i64: 4, 1>}, {transform_indices = @transform_3, window_bounds = array<i64: 1, 1, 1, 128>}]} {
    %c0_i32 = arith.constant 0 : i32
    %0 = arith.cmpi eq, %arg2, %c0_i32 : i32
    %1 = arith.extui %0 : i1 to i32
    %c0_i32_0 = arith.constant 0 : i32
    %2 = arith.cmpi ne, %1, %c0_i32_0 : i32
    scf.if %2 {
      %cst_22 = arith.constant 0.000000e+00 : f32
      %44 = vector.broadcast %cst_22 : f32 to vector<1x256xf32>
      %c0_23 = arith.constant 0 : index
      %c0_24 = arith.constant 0 : index
      %45 = vector.load %arg7[%c0_23, %c0_24] : memref<1x256xf32, #tpu.memory_space<vmem>>, vector<1x256xf32>
      tpu.vector_store %arg7[%c0_23, %c0_24], %44 {strides = array<i32>} : memref<1x256xf32, #tpu.memory_space<vmem>>, vector<1x256xf32>,
    } else {
    }
    %c0 = arith.constant 0 : index
    %c0_1 = arith.constant 0 : index
    %c0_2 = arith.constant 0 : index
    %3 = vector.load %arg3[%c0, %c0_1, %c0_2] : memref<1x4x256xf32, #tpu.memory_space<vmem>>, vector<1x4x256xf32>
    %c0_3 = arith.constant 0 : index
    %c0_4 = arith.constant 0 : index
    %c0_5 = arith.constant 0 : index
    %4 = vector.load %arg4[%c0_3, %c0_4, %c0_5] : memref<1x1x256xi32, #tpu.memory_space<vmem>>, vector<1x1x256xi32>
    %cst = arith.constant dense<0xFF800000> : vector<1x256xf32>
    %5 = vector.multi_reduction <maximumf>, %3, %cst [1] : vector<1x4x256xf32> to vector<1x256xf32>
    %6 = vector.shape_cast %5 : vector<1x256xf32> to vector<1x1x256xf32>
    %7 = vector.broadcast %6 : vector<1x1x256xf32> to vector<1x4x256xf32>
    %8 = arith.subf %3, %7 : vector<1x4x256xf32>
    %9 = math.exp %8 : vector<1x4x256xf32>
    %cst_6 = arith.constant dense<0.000000e+00> : vector<1x256xf32>
    %10 = vector.multi_reduction <add>, %9, %cst_6 [1] : vector<1x4x256xf32> to vector<1x256xf32>
    %11 = vector.shape_cast %10 : vector<1x256xf32> to vector<1x1x256xf32>
    %12 = math.log %11 : vector<1x1x256xf32>
    %13 = tpu.iota {dimensions = array<i32: 1>} : vector<1x4x256xi32>
    %14 = vector.broadcast %4 : vector<1x1x256xi32> to vector<1x4x256xi32>
    %15 = arith.cmpi eq, %13, %14 : vector<1x4x256xi32>
    %cst_7 = arith.constant 0.000000e+00 : f32
    %16 = vector.broadcast %cst_7 : f32 to vector<1x4x256xf32>
    %17 = arith.select %15, %8, %16 : vector<1x4x256xi1>, vector<1x4x256xf32>
    %cst_8 = arith.constant dense<0.000000e+00> : vector<1x256xf32>
    %18 = vector.multi_reduction <add>, %17, %cst_8 [1] : vector<1x4x256xf32> to vector<1x256xf32>
    %19 = vector.shape_cast %18 : vector<1x256xf32> to vector<1x1x256xf32>
    %20 = arith.subf %19, %12 : vector<1x1x256xf32>
    %21 = math.exp %20 : vector<1x1x256xf32>
    %cst_9 = arith.constant 1.000000e+00 : f32
    %22 = vector.broadcast %cst_9 : f32 to vector<1x1x256xf32>
    %23 = arith.subf %22, %21 : vector<1x1x256xf32>
    %24 = arith.mulf %23, %23 : vector<1x1x256xf32>
    %c0_10 = arith.constant 0 : index
    %c0_11 = arith.constant 0 : index
    %25 = vector.load %arg5[%c0_10, %c0_11] : memref<4x1xf32, #tpu.memory_space<vmem>>, vector<4x1xf32>
    %26 = vector.shape_cast %25 : vector<4x1xf32> to vector<1x4x1xf32>
    %cst_12 = arith.constant 0.000000e+00 : f32
    %27 = vector.shape_cast %26 : vector<1x4x1xf32> to vector<1x4x1xf32>
    %28 = vector.broadcast %27 : vector<1x4x1xf32> to vector<1x4x256xf32>
    %29 = vector.broadcast %cst_12 : f32 to vector<1x4x256xf32>
    %30 = arith.select %15, %28, %29 : vector<1x4x256xi1>, vector<1x4x256xf32>
    %cst_13 = arith.constant dense<0.000000e+00> : vector<1x256xf32>
    %31 = vector.multi_reduction <add>, %30, %cst_13 [1] : vector<1x4x256xf32> to vector<1x256xf32>
    %32 = vector.shape_cast %31 : vector<1x256xf32> to vector<1x1x256xf32>
    %cst_14 = arith.constant 0.000000e+00 : f32
    %33 = vector.broadcast %cst_14 : f32 to vector<1x1x256xf32>
    %34 = arith.subf %33, %24 : vector<1x1x256xf32>
    %35 = arith.mulf %32, %20 : vector<1x1x256xf32>
    %36 = arith.mulf %34, %35 : vector<1x1x256xf32>
    %cst_15 = arith.constant dense<0.000000e+00> : vector<1x256xf32>
    %37 = vector.multi_reduction <add>, %36, %cst_15 [0] : vector<1x1x256xf32> to vector<1x256xf32>
    %c0_16 = arith.constant 0 : index
    %c0_17 = arith.constant 0 : index
    %38 = vector.load %arg7[%c0_16, %c0_17] : memref<1x256xf32, #tpu.memory_space<vmem>>, vector<1x256xf32>
    %39 = arith.addf %38, %37 : vector<1x256xf32>
    %c0_18 = arith.constant 0 : index
    %c0_19 = arith.constant 0 : index
    %40 = vector.load %arg7[%c0_18, %c0_19] : memref<1x256xf32, #tpu.memory_space<vmem>>, vector<1x256xf32>
    tpu.vector_store %arg7[%c0_18, %c0_19], %39 {strides = array<i32>} : memref<1x256xf32, #tpu.memory_space<vmem>>, vector<1x256xf32>,
    %c0_i32_20 = arith.constant 0 : i32
    %41 = arith.cmpi eq, %arg2, %c0_i32_20 : i32
    %42 = arith.extui %41 : i1 to i32
    %c0_i32_21 = arith.constant 0 : i32
    %43 = arith.cmpi ne, %42, %c0_i32_21 : i32
    scf.if %43 {
      %c0_22 = arith.constant 0 : index
      %c0_23 = arith.constant 0 : index
      %44 = vector.load %arg7[%c0_22, %c0_23] : memref<1x256xf32, #tpu.memory_space<vmem>>, vector<1x256xf32>
      %45 = vector.shape_cast %44 : vector<1x256xf32> to vector<1x1x256xf32>
      %cst_24 = arith.constant dense<0.000000e+00> : vector<1xf32>
      %46 = vector.multi_reduction <add>, %45, %cst_24 [1, 2] : vector<1x1x256xf32> to vector<1xf32>
      %47 = vector.shape_cast %46 : vector<1xf32> to vector<1x1x1xf32>
      %48 = vector.extract %47[0, 0, 0] : f32 from vector<1x1x1xf32>
      %49 = vector.broadcast %48 : f32 to vector<1x1x1x128xf32>
      %c0_25 = arith.constant 0 : index
      %c0_26 = arith.constant 0 : index
      %c0_27 = arith.constant 0 : index
      %c0_28 = arith.constant 0 : index
      %50 = vector.load %arg6[%c0_25, %c0_26, %c0_27, %c0_28] : memref<1x1x1x128xf32, #tpu.memory_space<vmem>>, vector<1x1x1x128xf32>
      tpu.vector_store %arg6[%c0_25, %c0_26, %c0_27, %c0_28], %49 {strides = array<i32>} : memref<1x1x1x128xf32, #tpu.memory_space<vmem>>, vector<1x1x1x128xf32>,
    } else {
    }
    return
  }
  func.func @transform_0(%arg0: i32, %arg1: i32, %arg2: i32) -> (i32, i32, i32) {
    %c1_i32 = arith.constant 1 : i32
    %0 = arith.muli %arg1, %c1_i32 : i32
    %1 = arith.addi %0, %arg2 : i32
    %c0_i32 = arith.constant 0 : i32
    %2 = arith.minsi %1, %c0_i32 : i32
    %c0_i32_0 = arith.constant 0 : i32
    %c0_i32_1 = arith.constant 0 : i32
    return %arg0, %c0_i32_0, %2 : i32, i32, i32
  }
  func.func @transform_1(%arg0: i32, %arg1: i32, %arg2: i32) -> (i32, i32, i32) {
    %c1_i32 = arith.constant 1 : i32
    %0 = arith.muli %arg1, %c1_i32 : i32
    %1 = arith.addi %0, %arg2 : i32
    %c0_i32 = arith.constant 0 : i32
    %2 = arith.minsi %1, %c0_i32 : i32
    %c0_i32_0 = arith.constant 0 : i32
    %c0_i32_1 = arith.constant 0 : i32
    return %arg0, %c0_i32_0, %2 : i32, i32, i32
  }
  func.func @transform_2(%arg0: i32, %arg1: i32, %arg2: i32) -> (i32, i32) {
    %c0_i32 = arith.constant 0 : i32
    %c0_i32_0 = arith.constant 0 : i32
    %c0_i32_1 = arith.constant 0 : i32
    return %c0_i32, %c0_i32_0 : i32, i32
  }
  func.func @transform_3(%arg0: i32, %arg1: i32, %arg2: i32) -> (i32, i32, i32, i32) {
    %c0_i32 = arith.constant 0 : i32
    %c0_i32_0 = arith.constant 0 : i32
    %c0_i32_1 = arith.constant 0 : i32
    return %arg0, %arg1, %c0_i32, %c0_i32_0 : i32, i32, i32, i32
  }
}

</mosaic_0001>

<bundles_post_ra>
// kernel: tpu_custom_call.1
= control target key start
LH: loop header
LB: loop body
LE: loop exit
PB: predicated region body
PF: predicated region fallthrough
CT: control target
= control target key end

     0   :  { %8 = vsyncpa [#allocation4], 0  ;;  %s946_s0 = inlined_call_operand.hbm [shape: f32[2,4,256], index: 0, kind: input, shape index: {}]   ;;  %s947_s1 = inlined_call_operand.vmem [shape: s32[2,1,256], index: 1, kind: input, shape index: {}]   ;;  %s948_s2 = inlined_call_operand.vmem [shape: f32[4,1], index: 2, kind: input, shape index: {}]   ;;  %s949_s3 = inlined_call_operand.hbm [shape: f32[2,1,1,128], index: 3, kind: output, shape index: {}]  }
   0x1   :  { %10 = vsyncpa [#allocation4 + $0x1], 0 }
   0x2   :  { %11 = vsyncpa [#allocation5], 0 }
   0x3   :  { %13 = vsyncpa [#allocation5 + $0x1], 0  ;;  %s784_s12 = smov 0   ;;  %s786_s13 = smov 0  }
   0x4   :  { %s788_s14 = smov 0   ;;  %s790_s15 = smov 0  }
   0x5   :  { %s792_s16 = smov 0   ;;  %s794_s17 = smov 0  }
   0x6 LB: > { %s558_s18 = sadd.s32 4294967295, %s760_s17   ;;  %s559_s19 = sadd.s32 4294967294, %s760_s17   ;;  %s760_s17 = sphi %s794_s17, %s19_s17   ;;  %s756_s16 = sphi %s792_s16, %s964_s16   ;;  %s752_s15 = sphi %s790_s15, %s963_s15   ;;  %s748_s14 = sphi %s788_s14, %s962_s14   ;;  %s744_s13 = sphi %s786_s13, %s961_s13   ;;  %s740_s12 = sphi %s784_s12, %s960_s12  }
   0x7   : > { %s38_s20 = sadd.s32 1, %s756_s16  ;;  %s53_s21 = sadd.s32 1, %s748_s14 }
   0x8   : > { %p40_p0 = scmp.ge.s32.totalorder %s38_s20, 2  ;;  %p60_p1 = scmp.ne.s32.totalorder %s748_s14, %s744_s13 }
   0x9   : > { %p61_p2 = scmp.eq.s32.totalorder %s760_s17, 0  ;;  %p66_p3 = scmp.ne.s32.totalorder %s744_s13, %s740_s12 }
   0xa   : > { %s966_s20 = smov (%p40_p0, %s38_s20), 0  ;;  %p67_p5 = scmp.eq.s32.totalorder %s558_s18, 0 }
   0xb   : > { %p825_p4 = por %p61_p2, %p60_p1  ;;  %s48_s23 = ssub.s32 %s756_s16, %s966_s20 }
   0xc   : > { %p147_p6 = scmp.eq.s32.totalorder %s558_s18, 1  ;;  %p51_p7 = scmp.eq.s32.totalorder %s48_s23, 0 }
   0xd   : > { %p831_p8 = por %p67_p5, %p66_p3  ;;  %p153_p10 = scmp.eq.s32.totalorder %s559_s19, 1 }
   0xe   : > { %p835_p9 = por %p147_p6, %p60_p1  ;;  %p561_p12 = scmp.ge.s32.totalorder %s760_s17, 2 }
   0xf   : > { %s840_s26 = scalar_select %p51_p7, %s748_s14, %s53_s21  }
  0x10   : > { %p842_p11 = por %p153_p10, %p66_p3  ;;  %p585_p13 = scmp.lt.s32.totalorder %s760_s17, 2 }
  0x11   : > { %s176_s28 = sand.u32 1, %s748_s14   ;;  %s570_s30 = sshll.u32 %s756_s16, 3 }
  0x12   : > { %s562_s29 = sshll.u32 %s176_s28, 3  ;;  %s190_s6 = scalar_lea.hbm %s946_s0, %s570_s30 }
  0x13   : > { %s180_s7 = scalar_lea.vmem [#allocation3], %s562_s29  ;;  %s192_s9 = sshll.u32 %s190_s6, 4  ;;  %s193_s9 = int_to_ptr.hbm [resolvable:$true] %s192_s9 }
  0x14   : > { %s194_s8 = sshll.u32 %s180_s7, 4  ;;  %p578_p0 = pnand %p585_p13, %p825_p4  ;;  %s195_s8 = int_to_ptr.vmem [resolvable:$true] %s194_s8 }
  0x15   : > { %p565_p1 = scmp.ge.s32.totalorder %s760_s17, 1  ;;  %p217_p2 = scmp.lt.s32.totalorder %s760_s17, 3 }
  0x16   : > { %s177_s10 = scalar_lea.sflag [#allocation4], %s176_s28 }
  0x17   : > { %580 = dma.hbm_to_vmem [thread:$0]  (!%p578_p0), %s193_s9, 128, %s195_s8, %s177_s10  }
  0x18   : > { %p218_p3 = pnand %p565_p1, %p217_p2 }
  0x19   : > { %s858_s11 = sand.u32 (!%p218_p3), 1, %s744_s13  }
  0x1a   : > { %221 = sbr.rel (%p218_p3) target bundleno = 367 (0x16f), region = 32  ;;  %s566_s18 = sshll.u32 (!%p218_p3), %s858_s11, 3 }
  0x1b   : > { %s224_s19 = scalar_lea.sflag (!%p218_p3), [#allocation4], %s858_s11  ;;  %s227_s21 = scalar_lea.vmem (!%p218_p3), [#allocation3], %s566_s18 }
  0x1f   : > { %731 = dma.done.wait (%p831_p8), %s224_s19, 128  }
  0x20   : > { %733 = vsyncadd (%p831_p8), %s224_s19, 4294967168  ;;  %v284_v0 = vlaneseq  ;;  %v762_v1 = vmov 0   ;;  %v763_v3 = vmov 0.0   ;;  %v382_v4 = vld [vmem:[%s948_s2] sm:$0xf]  ;;  %v289_v5 = vld [vmem:[%s227_s21] sm:$0xff]  ;;  %s458_s7 = scalar_lea.hbm %s949_s3, %s752_s15 }
  0x21   : > { %637 = vset.pattern.permute.xlu0 %v762_v1  ;;  %292 = vst [vmem:[#allocation1] ss:$2 sm:$0xff] %v289_v5  ;;  %vm297_vm1 = vcmask 1043456   ;;  %p269_p4 = scmp.lt.s32.totalorder %s752_s15, 1  ;;  %vm416_vm4 = vcmask 1040384   ;;  %s260_s8 = scalar_lea.vmem [#allocation6], %s858_s11 }
  0x22   : > { %vm866_vm0 = vcmp.lt.s32.totalorder %v284_v0, 256  ;;  %385 = vperm.xlu0 %637, %v382_v4   ;;  %v345_v32 = vshrl.u32 %v284_v0, 7  ;;  %s460_s9 = sshll.u32 %s260_s8, 4  ;;  %s462_s10 = sshll.u32 %s458_s7, 4  ;;  %s461_s9 = int_to_ptr.vmem [resolvable:$true] %s460_s9  ;;  %s463_s10 = int_to_ptr.hbm [resolvable:$true] %s462_s10 }
  0x23   : > { %288 = vst.msk [vmem:[#allocation2] sm:$0x3] %vm866_vm0, %v763_v3  ;;  %s270_s24 = scalar_select %p269_p4, %s752_s15, 1 }
  0x24   : > { %s449_s19 = scalar_lea.sflag [#allocation5], %s858_s11  ;;  %s692_s21 = sshra.s32 %s463_s10, 4  ;;  %s693_s21 = int_to_ptr.hbm [resolvable:$true] %s692_s21 }
  0x25   : > { %s567_s28 = sshll.u32 %s270_s24, 1  ;;  %s694_s22 = scalar_lea.hbm %s693_s21, 1 }
  0x26   : > { %s275_s4 = scalar_lea.vmem %s947_s1, %s567_s28  ;;  %p695_p5 = scmp.ne.s32.totalorder %s693_s21, %s694_s22 }
  0x27   : > { %v290_v30 = vld [vmem:[%s275_s4] sm:$0x3]  ;;  %s698_s15 = scalar_lea.hbm %s949_s3, 2  ;;  %p699_p8 = scmp.lt.s32.totalorder %s693_s21, %s949_s3 }
  0x28   : > { %v294_v6 = vld.sshfl [vmem:[#allocation1 + $0x8] sm:$0xff pattern:$0x75316420]  ;;  %v293_v8 = vld.sshfl [vmem:[#allocation1] sm:$0xff pattern:$0x75316420]  ;;  %p696_p6 = pnand %p695_p5, %p835_p9  ;;  %p700_p10 = scmp.lt.s32.totalorder %s698_s15, %s694_s22 }
  0x29   : > { %v305_v7 = vsel %vm297_vm1, %v294_v6, -inf  ;;  %v298_v10 = vsel %vm297_vm1, %v293_v8, -inf  ;;  %v347_v34 = vperm.slane %v290_v30, 1  ;;  %v346_v36 = vperm.slane %v290_v30, 0 }
  0x2a   : > { %v306_v9 = vrot.slane %v305_v7, 4  ;;  %v299_v11 = vrot.slane %v298_v10, 4  ;;  %v412_v41 = vld [vmem:[#allocation2] sm:$0x3]  ;;  %p697_p7 = pneg %p696_p6  ;;  %p701_p13 = por %p700_p10, %p699_p8 }
  0x2b   : > { %vm885_vm2 = vcmp.eq.s32.totalorder %v345_v32, %v347_v34  ;;  %vm889_vm3 = vcmp.eq.s32.totalorder %v345_v32, %v346_v36 }
  0x2c   : > { %v307_v12 = vmax.f32 %v305_v7, %v306_v9  ;;  %v300_v13 = vmax.f32 %v298_v10, %v299_v11  ;;  %p702_p0 = pnand %p701_p13, %p697_p7 }
  0x2e   : > { %v308_v14 = vrot.slane %v307_v12, 2  ;;  %v301_v15 = vrot.slane %v300_v13, 2 }
  0x30   : > { %v309_v16 = vmax.f32 %v307_v12, %v308_v14  ;;  %v302_v17 = vmax.f32 %v300_v13, %v301_v15 }
  0x32   : > { %v310_v18 = vrot.slane %v309_v16, 1  ;;  %v303_v19 = vrot.slane %v302_v17, 1 }
  0x34   : > { %v311_v20 = vmax.f32 %v309_v16, %v310_v18  ;;  %v304_v21 = vmax.f32 %v302_v17, %v303_v19 }
  0x36   : > { %v314_v22 = vrot.slane %v311_v20, 4 }
  0x38   : > { %v315_v23 = vsel %vm297_vm1, %v304_v21, %v314_v22 }
  0x39   : > { %v317_v24 = vsub.f32 %v289_v5, %v315_v23 }
  0x3b   : > { %v318_v25 = vmul.f32 1.442695, %v317_v24 }
  0x3d   : > { %638 = vpow2.f32 %v318_v25 }
  0x43   : > { %v639_v26 = vpop.eup %638 }
  0x44   : > { %321 = vst [vmem:[#allocation1] ss:$2 sm:$0xff] %v639_v26 }
  0x4b   : > { %v322_v27 = vld.sshfl [vmem:[#allocation1] sm:$0xff pattern:$0x75316420]  ;;  %v323_v28 = vld.sshfl [vmem:[#allocation1 + $0x8] sm:$0xff pattern:$0x75316420] }
  0x4c   : > { %351 = vst [vmem:[#allocation1] ss:$2 sm:$0xff] %v317_v24  ;;  %v333_v29 = vsel %vm297_vm1, %v323_v28, 0.0  ;;  %v326_v31 = vsel %vm297_vm1, %v322_v27, 0.0 }
  0x4d   : > { %v334_v33 = vrot.slane %v333_v29, 4  ;;  %v327_v35 = vrot.slane %v326_v31, 4 }
  0x4f   : > { %v335_v37 = vadd.f32 %v334_v33, %v333_v29  ;;  %v328_v40 = vadd.f32 %v327_v35, %v326_v31 }
  0x51   : > { %v336_v44 = vrot.slane %v335_v37, 2  ;;  %v329_v46 = vrot.slane %v328_v40, 2 }
  0x53   : > { %v353_v39 = vld.sshfl [vmem:[#allocation1 + $0x8] sm:$0xff pattern:$0x75316420]  ;;  %v352_v42 = vld.sshfl [vmem:[#allocation1] sm:$0xff pattern:$0x75316420]  ;;  %v337_v48 = vadd.f32 %v336_v44, %v335_v37  ;;  %v330_v51 = vadd.f32 %v329_v46, %v328_v40 }
  0x54   : > { %v357_v43 = vsel %vm885_vm2, %v353_v39, 0.0  ;;  %v356_v45 = vsel %vm889_vm3, %v352_v42, 0.0 }
  0x55   : > { %v365_v47 = vsel %vm297_vm1, %v357_v43, 0.0  ;;  %v358_v49 = vsel %vm297_vm1, %v356_v45, 0.0  ;;  %v338_v53 = vrot.slane %v337_v48, 1  ;;  %v331_v55 = vrot.slane %v330_v51, 1 }
  0x56   : > { %v366_v50 = vrot.slane %v365_v47, 4  ;;  %v359_v52 = vrot.slane %v358_v49, 4 }
  0x57   : > { %v339_v57 = vadd.f32 %v338_v53, %v337_v48  ;;  %v332_v59 = vadd.f32 %v331_v55, %v330_v51 }
  0x58   : > { %v367_v54 = vadd.f32 %v366_v50, %v365_v47  ;;  %v360_v56 = vadd.f32 %v359_v52, %v358_v49 }
  0x59   : > { %640 = vlog2.f32 %v339_v57 }
  0x5a   : > { %v368_v58 = vrot.slane %v367_v54, 2  ;;  %v361_v60 = vrot.slane %v360_v56, 2  ;;  %642 = vlog2.f32 %v332_v59 }
  0x5c   : > { %v369_v61 = vadd.f32 %v368_v58, %v367_v54  ;;  %v362_v62 = vadd.f32 %v361_v60, %v360_v56 }
  0x5e   : > { %v370_v63 = vrot.slane %v369_v61, 1  ;;  %v363_v1 = vrot.slane %v362_v62, 1 }
  0x5f   : > { %v641_v0 = vpop.eup %640 }
  0x60   : > { %v643_v3 = vpop.eup %642  ;;  %v343_v4 = vmul.f32 0.6931472, %v641_v0  ;;  %v371_v5 = vadd.f32 %v370_v63, %v369_v61  ;;  %v364_v7 = vadd.f32 %v363_v1, %v362_v62 }
  0x61   : > { %v341_v6 = vmul.f32 0.6931472, %v643_v3 }
  0x62   : > { %v373_v8 = vsub.f32 %v371_v5, %v343_v4 }
  0x63   : > { %v372_v9 = vsub.f32 %v364_v7, %v341_v6 }
  0x64   : > { %v376_v10 = vmul.f32 1.442695, %v373_v8 }
  0x65   : > { %v374_v11 = vmul.f32 1.442695, %v372_v9 }
  0x66   : > { %644 = vpow2.f32 %v376_v10 }
  0x67   : > { %646 = vpow2.f32 %v374_v11 }
  0x6c   : > { %v645_v15 = vpop.eup %644 }
  0x6d   : > { %v647_v20 = vpop.eup %646  ;;  %v379_v21 = vsub.f32 1.0, %v645_v15 }
  0x6e   : > { %v378_v26 = vsub.f32 1.0, %v647_v20 }
  0x6f   : > { %v381_v27 = vmul.f32 %v379_v21, %v379_v21 }
  0x70   : > { %v380_v32 = vmul.f32 %v378_v26, %v378_v26 }
  0x71   : > { %v405_v35 = vsub.f32 0.0, %v381_v27 }
  0x72   : > { %v404_v38 = vsub.f32 0.0, %v380_v32 }
  0x94   : > { %v386_v12 = vpop.permute.xlu0 %385 }
  0x95   : > { %v388_v13 = vsel %vm889_vm3, %v386_v12, 0.0  ;;  %v389_v14 = vsel %vm885_vm2, %v386_v12, 0.0 }
  0x96   : > { %v390_v16 = vsel %vm297_vm1, %v388_v13, 0.0  ;;  %v397_v17 = vsel %vm297_vm1, %v389_v14, 0.0 }
  0x97   : > { %v391_v18 = vrot.slane %v390_v16, 4  ;;  %v398_v19 = vrot.slane %v397_v17, 4 }
  0x99   : > { %v392_v22 = vadd.f32 %v391_v18, %v390_v16  ;;  %v399_v23 = vadd.f32 %v398_v19, %v397_v17 }
  0x9b   : > { %v393_v24 = vrot.slane %v392_v22, 2  ;;  %v400_v25 = vrot.slane %v399_v23, 2 }
  0x9d   : > { %v394_v28 = vadd.f32 %v393_v24, %v392_v22  ;;  %v401_v29 = vadd.f32 %v400_v25, %v399_v23 }
  0x9f   : > { %v395_v30 = vrot.slane %v394_v28, 1  ;;  %v402_v31 = vrot.slane %v401_v29, 1 }
  0xa1   : > { %v396_v33 = vadd.f32 %v395_v30, %v394_v28  ;;  %v403_v34 = vadd.f32 %v402_v31, %v401_v29 }
  0xa3   : > { %v406_v36 = vmul.f32 %v396_v33, %v372_v9  ;;  %v407_v37 = vmul.f32 %v403_v34, %v373_v8 }
  0xa5   : > { %v409_v39 = vmul.f32 %v407_v37, %v405_v35  ;;  %v408_v40 = vmul.f32 %v406_v36, %v404_v38 }
  0xa7   : > { %v415_v42 = vrot.slane %v409_v39, 7 }
  0xa9   : > { %v417_v43 = vsel %vm416_vm4, %v408_v40, %v415_v42 }
  0xaa   : > { %v419_v44 = vadd.f32 %v417_v43, %v412_v41 }
  0xac   : > { %424 = vst.msk [vmem:[#allocation2] sm:$0x3] %vm866_vm0, %v419_v44 }
  0xb3   : > { %v428_v45 = vld [vmem:[#allocation2] sm:$0x3] }
  0xb4   : > { %v430_v46 = vperm.slane %v428_v45, 0  ;;  %v431_v47 = vperm.slane %v428_v45, 1 }
  0xb6   : > { %v434_v48 = vsel %vm416_vm4, %v430_v46, 0.0  ;;  %v435_v49 = vsel %vm416_vm4, %v431_v47, 0.0 }
  0xb7   : > { %v436_v50 = vadd.f32 %v435_v49, %v434_v48 }
  0xb9   : > { %437 = vadd.xlane.f32.xlu0 %v436_v50 }
 0x12c   : > { %v438_v51 = vpop.xlane.xlu0 %437 }
 0x12d   : > { %v439_v52 = vrot.slane %v438_v51, 4 }
 0x12f   : > { %v440_v53 = vadd.f32 %v439_v52, %v438_v51 }
 0x131   : > { %v441_v54 = vrot.slane %v440_v53, 2 }
 0x133   : > { %v442_v55 = vadd.f32 %v441_v54, %v440_v53 }
 0x135   : > { %v443_v56 = vrot.slane %v442_v55, 1 }
 0x137   : > { %v444_v57 = vadd.f32 %v443_v56, %v442_v55 }
 0x139   : > { %571 = vpush %v444_v57 }
 0x16a   : > { %s572_s18 = spop %571 }
 0x16b   : > { %v446_v2 = vstv %s572_s18 }
 0x16c   : > { %447 = vst [vmem:[%s260_s8] sm:$0x1] %v446_v2 }
 0x16d   : > { %705 = shalt.err (!%p702_p0)
}
 0x16e   : > { %575 = dma.vmem_to_hbm [thread:$0]  (%p835_p9), %s461_s9, 16, %s463_s10, %s449_s19  }
 0x16f PF: > { %s474_s11 = sand.u32 1, %s740_s12   ;;  %p582_p1 = pnand %p561_p12, %p842_p11 }
 0x170   : > { %s475_s30 = scalar_lea.sflag [#allocation5], %s474_s11 }
 0x171   : > { %p583_p2 = pneg %p582_p1 }
 0x173   : > { %735 = dma.done.wait (%p583_p2), %s475_s30, 16  }
 0x174   : > { %737 = vsyncadd (%p583_p2), %s475_s30, 4294967280  ;;  %s19_s17 = sadd.s32 1, %s760_s17   ;;  %s960_s12 = smov %s744_s13 }
 0x175   : > { %p16_p3 = scmp.ge.s32.totalorder %s19_s17, 4   ;;  %s961_s13 = smov %s748_s14 }
 0x176   : > { %s962_s14 = smov %s840_s26  ;;  %s963_s15 = smov %s756_s16 }
 0x177   : > { %s964_s16 = smov %s966_s20  ;;  %18 = sbr.rel (!%p16_p3) target bundleno = 6 (0x6), region = 88 }
 0x17c   :  { %480 = vsyncpa [#allocation4], 1 }
 0x17d   :  { %482 = vsyncpa [#allocation4 + $0x1], 1 }
 0x17e   :  { %483 = vsyncpa [#allocation5], 1 }
 0x17f   :  { %485 = vsyncpa [#allocation5 + $0x1], 1 }

</bundles_post_ra>
